<compile_context>
chip_gen: v6e
topology: v6e:2x2x1
jax: 0.10.0
libtpu: 0.0.40
codegen_flags: <defaults>
</compile_context>

<pallas_src>
import functools

import numpy as np
import jax
import jax.numpy as jnp
from jax.experimental import pallas as pl
from jax.experimental.pallas import tpu as pltpu


def _complex_convT1d_kernel(x_ref, w_ref, b_ref, o_ref, *, K, dil, L_out, C_out2):
    """NB batch elements per grid step; channels on sublanes, L on lanes.

    x_ref: (NB, 2*C_in, L_pad)    [x_re ; x_im] stacked on the channel axis,
                                  already zero-padded along L for the transpose.
    w_ref: (K*2*C_out, 2*C_in)    per (flipped) tap k: [[wr_k^T, wi_k^T],
                                                        [-wi_k^T, wr_k^T]]
    b_ref: (2*C_out, 1)           [b_re + b_im ; b_re - b_im]
    o_ref: (NB, 2*C_out, L_out)   [out_re ; out_im]
    """
    w = w_ref[...]                         # hoisted: loaded once per grid step
    b = b_ref[...]
    NB = o_ref.shape[0]
    for nb in range(NB):                   # static unroll; NB is small
        x = x_ref[nb]                      # (2*C_in, L_pad)
        # Single MXU push: all taps + the real/imag combination at once.
        y = jnp.dot(w, x, preferred_element_type=jnp.float32)  # (K*2*C_out, L_pad)
        # Gather-style tap reduction: shifted reads of y, one aligned store.
        acc = b + y[0:C_out2, 0:L_out]
        for k in range(1, K):
            acc = acc + y[k * C_out2:(k + 1) * C_out2, k * dil:k * dil + L_out]
        o_ref[nb] = acc


def _pick_batch_block(N):
    """Largest power-of-two batch block that divides N while keeping >= 2 grid
    steps (so v7x can still shard the grid across its two TensorCores)."""
    for cand in (8, 4, 2):
        if N % cand == 0 and (N // cand) >= 2:
            return cand
    return 1


def complex_conv_transpose1d(x, weight, bias=None, *, stride=1, padding=0,
                             output_padding=0, groups=1, dilation=1):
    """x: complex (N, C_in, L_in); weight: complex (C_in, C_out//groups, K)."""
    if stride != 1 or groups != 1:
        # TODO(synk): stride>1 needs a strided gather of the padded input and
        # groups>1 block-diagonal weights; module defaults are 1/1.
        raise NotImplementedError("only stride=1, groups=1 implemented")

    N, C_in, L_in = x.shape
    C_in_w, C_out, K = weight.shape
    assert C_in_w == C_in
    L_out = (L_in - 1) * stride - 2 * padding + dilation * (K - 1) \
            + output_padding + 1
    assert L_out >= 1, "invalid output length"
    L_pad = L_out + dilation * (K - 1)       # padded input length seen by kernel

    f32 = jnp.float32
    xr = jnp.real(x).astype(f32)             # (N, C_in, L_in), NCL kept
    xi = jnp.imag(x).astype(f32)

    # Effective zero padding of the transposed conv:
    #   left  = dilation*(K-1) - padding
    #   right = left + output_padding
    lp = dilation * (K - 1) - padding
    rp = lp + output_padding

    def _pad_crop(a):
        a = jnp.pad(a, ((0, 0), (0, 0), (max(lp, 0), max(rp, 0))))
        s = max(-lp, 0)
        return jax.lax.slice_in_dim(a, s, s + L_pad, axis=2)

    # Interleave re/im on the channel axis -> one input stream / one DMA.
    x_cat = jnp.concatenate([_pad_crop(xr), _pad_crop(xi)], axis=1)  # (N, 2C_in, L_pad)

    # Stacked, tap-flipped weight (K*2*C_out, 2*C_in).  Tiny; built once per call.
    wr = jnp.flip(jnp.real(weight).astype(f32), axis=2)             # flip taps
    wi = jnp.flip(jnp.imag(weight).astype(f32), axis=2)
    wrT = jnp.transpose(wr, (2, 1, 0))                               # (K, C_out, C_in)
    wiT = jnp.transpose(wi, (2, 1, 0))
    top = jnp.concatenate([wrT, wiT], axis=2)                        # -> real outputs
    bot = jnp.concatenate([-wiT, wrT], axis=2)                       # -> imag outputs
    w_big = jnp.concatenate([top, bot], axis=1).reshape(K * 2 * C_out, 2 * C_in)

    # Combined bias: real rows get (br + bi), imag rows get (br - bi).
    if bias is None:
        b_cat = jnp.zeros((2 * C_out, 1), f32)
    else:
        br = jnp.real(bias).astype(f32)
        bi = jnp.imag(bias).astype(f32)
        b_cat = jnp.concatenate([br + bi, br - bi]).reshape(2 * C_out, 1)

    NB = _pick_batch_block(N)
    grid = (N // NB,)

    kernel = functools.partial(_complex_convT1d_kernel, K=K, dil=dilation,
                               L_out=L_out, C_out2=2 * C_out)

    grid_spec = pltpu.PrefetchScalarGridSpec(
        num_scalar_prefetch=0,
        grid=grid,
        in_specs=[
            pl.BlockSpec((NB, 2 * C_in, L_pad), lambda n: (n, 0, 0)),     # x
            pl.BlockSpec((K * 2 * C_out, 2 * C_in), lambda n: (0, 0)),    # weight
            pl.BlockSpec((2 * C_out, 1), lambda n: (0, 0)),               # bias
        ],
        out_specs=pl.BlockSpec((NB, 2 * C_out, L_out), lambda n: (n, 0, 0)),
    )

    out = pl.pallas_call(
        kernel,
        out_shape=jax.ShapeDtypeStruct((N, 2 * C_out, L_out), f32),
        grid_spec=grid_spec,
        compiler_params=pltpu.CompilerParams(
            dimension_semantics=("parallel",)),
    )(x_cat, w_big, b_cat)

    out_re = out[:, :C_out, :]
    out_im = out[:, C_out:, :]
    return jax.lax.complex(out_re, out_im)


def _reference(x, w, b, stride, padding, output_padding, dilation):
    """Direct numpy replica of complex_conv_transpose(F.conv_transpose1d, ...)."""
    N, C_in, L_in = x.shape
    _, C_out, K = w.shape
    L_out = (L_in - 1) * stride - 2 * padding + dilation * (K - 1) \
            + output_padding + 1
    xr, xi = x.real.astype(np.float32), x.imag.astype(np.float32)
    wr, wi = w.real.astype(np.float32), w.imag.astype(np.float32)
    o_re = np.zeros((N, C_out, L_out), np.float32)
    o_im = np.zeros((N, C_out, L_out), np.float32)
    for s in range(L_in):
        for k in range(K):
            t = s * stride + k * dilation - padding
            if 0 <= t < L_out:
                o_re[:, :, t] += xr[:, :, s] @ wr[:, :, k] + xi[:, :, s] @ wi[:, :, k]
                o_im[:, :, t] += xi[:, :, s] @ wr[:, :, k] - xr[:, :, s] @ wi[:, :, k]
    if b is not None:
        br, bi = b.real.astype(np.float32), b.imag.astype(np.float32)
        o_re += (br + bi)[None, :, None]
        o_im += (br - bi)[None, :, None]
    return (o_re + 1j * o_im).astype(np.complex64)


if __name__ == "__main__":
    # Small shapes consistent with the module: N=2, C_in=4, C_out=8, L_in=16, K=3
    N, C_in, C_out, L_in, K = 2, 4, 8, 16, 3

    key = jax.random.PRNGKey(0)
    kxr, kxi, kwr, kwi, kbr, kbi = jax.random.split(key, 6)

    x = (jax.random.normal(kxr, (N, C_in, L_in), jnp.float32)
         + 1j * jax.random.normal(kxi, (N, C_in, L_in), jnp.float32)
         ).astype(jnp.complex64)

    # ConvTranspose1d weight shape: (in_channels, out_channels // groups, K)
    fan_in = C_out * K
    bound = 1.0 / np.sqrt(fan_in)
    w = (jax.random.uniform(kwr, (C_in, C_out, K), jnp.float32, -bound, bound)
         + 1j * jax.random.uniform(kwi, (C_in, C_out, K), jnp.float32, -bound, bound)
         ).astype(jnp.complex64)
    b = (jax.random.uniform(kbr, (C_out,), jnp.float32, -bound, bound)
         + 1j * jax.random.uniform(kbi, (C_out,), jnp.float32, -bound, bound)
         ).astype(jnp.complex64)

    # config 1: defaults-ish (stride=1, padding=1, no output_padding, dil=1)
    # config 2: dilation=2, padding=3, output_padding=1 (exercises the padded
    #           gather path / shifted-read tap reduction).
    configs = [
        dict(stride=1, padding=1, output_padding=0, dilation=1),
        dict(stride=1, padding=3, output_padding=1, dilation=2),
    ]

    for cfg in configs:
        out = complex_conv_transpose1d(x, w, b, **cfg)
        out = jax.block_until_ready(out)
        ref = _reference(np.asarray(x), np.asarray(w), np.asarray(b),
                         cfg["stride"], cfg["padding"],
                         cfg["output_padding"], cfg["dilation"])
        assert out.shape == ref.shape, (cfg, out.shape, ref.shape)
        np.testing.assert_allclose(np.asarray(out), ref, atol=1e-4, rtol=1e-4)

    print("KERNEL_OK")
</pallas_src>

<mosaic_0001>
module attributes {stable_mosaic.version = 11 : i64} {
  func.func @_complex_convT1d_kernel(%arg0: i32, %arg1: memref<1x8x18xf32, #tpu.memory_space<vmem>>, %arg2: memref<48x8xf32, #tpu.memory_space<vmem>>, %arg3: memref<16x1xf32, #tpu.memory_space<vmem>>, %arg4: memref<1x16x16xf32, #tpu.memory_space<vmem>>) attributes {dimension_semantics = [#tpu.dimension_semantics<parallel>], iteration_bounds = array<i64: 2>, scalar_prefetch = 0 : i64, scratch_operands = 0 : i64, tpu.core_type = #tpu.core_type<tc>, window_params = [{transform_indices = @transform_0, window_bounds = array<i64: 1, 8, 18>}, {pipeline_mode = #tpu.pipeline_mode<synchronous>, transform_indices = @transform_1, window_bounds = array<i64: 48, 8>}, {pipeline_mode = #tpu.pipeline_mode<synchronous>, transform_indices = @transform_2, window_bounds = array<i64: 16, 1>}, {transform_indices = @transform_3, window_bounds = array<i64: 1, 16, 16>}]} {
    %c0 = arith.constant 0 : index
    %c0_0 = arith.constant 0 : index
    %0 = vector.load %arg2[%c0, %c0_0] : memref<48x8xf32, #tpu.memory_space<vmem>>, vector<48x8xf32>
    %c0_1 = arith.constant 0 : index
    %c0_2 = arith.constant 0 : index
    %1 = vector.load %arg3[%c0_1, %c0_2] : memref<16x1xf32, #tpu.memory_space<vmem>>, vector<16x1xf32>
    %c0_3 = arith.constant 0 : index
    %c0_4 = arith.constant 0 : index
    %c0_5 = arith.constant 0 : index
    %2 = vector.load %arg1[%c0_3, %c0_4, %c0_5] : memref<1x8x18xf32, #tpu.memory_space<vmem>>, vector<1x8x18xf32>
    %3 = vector.shape_cast %2 : vector<1x8x18xf32> to vector<8x18xf32>
    %cst = arith.constant dense<0.000000e+00> : vector<48x18xf32>
    %4 = tpu.matmul %0, %3, %cst {dimension_numbers = #tpu.dot_dimension_numbers<[1], [0], [0], [1], [0, 0, 1, 1], [], []>} : vector<48x8xf32>, vector<8x18xf32>, vector<48x18xf32> -> vector<48x18xf32>
    %5 = vector.extract_strided_slice %4 {offsets = [0, 0], sizes = [16, 16], strides = [1, 1]} : vector<48x18xf32> to vector<16x16xf32>
    %6 = vector.broadcast %1 : vector<16x1xf32> to vector<16x16xf32>
    %7 = arith.addf %6, %5 : vector<16x16xf32>
    %8 = vector.extract_strided_slice %4 {offsets = [16, 1], sizes = [16, 16], strides = [1, 1]} : vector<48x18xf32> to vector<16x16xf32>
    %9 = arith.addf %7, %8 : vector<16x16xf32>
    %10 = vector.extract_strided_slice %4 {offsets = [32, 2], sizes = [16, 16], strides = [1, 1]} : vector<48x18xf32> to vector<16x16xf32>
    %11 = arith.addf %9, %10 : vector<16x16xf32>
    %c0_6 = arith.constant 0 : index
    %c0_7 = arith.constant 0 : index
    %c0_8 = arith.constant 0 : index
    %12 = vector.load %arg4[%c0_6, %c0_7, %c0_8] : memref<1x16x16xf32, #tpu.memory_space<vmem>>, vector<1x16x16xf32>
    %13 = vector.shape_cast %12 : vector<1x16x16xf32> to vector<16x16xf32>
    %14 = vector.shape_cast %11 : vector<16x16xf32> to vector<1x16x16xf32>
    tpu.vector_store %arg4[%c0_6, %c0_7, %c0_8], %14 {strides = array<i32>} : memref<1x16x16xf32, #tpu.memory_space<vmem>>, vector<1x16x16xf32>,
    return
  }
  func.func @transform_0(%arg0: i32) -> (i32, i32, i32) {
    %c0_i32 = arith.constant 0 : i32
    %c0_i32_0 = arith.constant 0 : i32
    %c0_i32_1 = arith.constant 0 : i32
    return %arg0, %c0_i32, %c0_i32_0 : i32, i32, i32
  }
  func.func @transform_1(%arg0: i32) -> (i32, i32) {
    %c0_i32 = arith.constant 0 : i32
    %c0_i32_0 = arith.constant 0 : i32
    %c0_i32_1 = arith.constant 0 : i32
    return %c0_i32, %c0_i32_0 : i32, i32
  }
  func.func @transform_2(%arg0: i32) -> (i32, i32) {
    %c0_i32 = arith.constant 0 : i32
    %c0_i32_0 = arith.constant 0 : i32
    %c0_i32_1 = arith.constant 0 : i32
    return %c0_i32, %c0_i32_0 : i32, i32
  }
  func.func @transform_3(%arg0: i32) -> (i32, i32, i32) {
    %c0_i32 = arith.constant 0 : i32
    %c0_i32_0 = arith.constant 0 : i32
    %c0_i32_1 = arith.constant 0 : i32
    return %arg0, %c0_i32, %c0_i32_0 : i32, i32, i32
  }
}

</mosaic_0001>

<bundles_post_ra>
// kernel: tpu_custom_call.1
= control target key start
LH: loop header
LB: loop body
LE: loop exit
PB: predicated region body
PF: predicated region fallthrough
CT: control target
= control target key end

     0   :  { %8 = vsyncpa [#allocation3], 0  ;;  %s703_s0 = inlined_call_operand.vmem [shape: f32[2,8,18], index: 0, kind: input, shape index: {}]   ;;  %s704_s1 = inlined_call_operand.vmem [shape: f32[48,8], index: 1, kind: input, shape index: {}]   ;;  %s705_s2 = inlined_call_operand.vmem [shape: f32[16,1], index: 2, kind: input, shape index: {}]   ;;  %s706_s3 = inlined_call_operand.hbm [shape: f32[2,16,16], index: 3, kind: output, shape index: {}]  }
   0x1   :  { %10 = vsyncpa [#allocation3 + $0x1], 0  ;;  %s571_s12 = smov 0   ;;  %s573_s13 = smov 0  }
   0x2   :  { %s575_s14 = smov 0   ;;  %s577_s15 = smov 0  }
   0x3 LB: > { %s592_s16 = sadd.s32 4294967295, %s543_s15   ;;  %s400_s17 = sadd.s32 4294967294, %s543_s15   ;;  %s543_s15 = sphi %s577_s15, %s712_s15   ;;  %s539_s14 = sphi %s575_s14, %s711_s14   ;;  %s535_s13 = sphi %s573_s13, %s710_s13   ;;  %s531_s12 = sphi %s571_s12, %s709_s12  }
   0x4   : > { %s596_s18 = sadd.s32 1, %s543_s15   ;;  %s91_s19 = sadd.s32 1, %s539_s14 }
   0x5   : > { %s88_s20 = ssub.s32 %s543_s15, %s596_s18  ;;  %p101_p0 = scmp.ne.s32.totalorder %s539_s14, %s535_s13 }
   0x6   : > { %p89_p1 = scmp.eq.s32.totalorder %s88_s20, 0  ;;  %p102_p2 = scmp.eq.s32.totalorder %s592_s16, 1 }
   0x7   : > { %p107_p3 = scmp.ne.s32.totalorder %s535_s13, %s531_s12  ;;  %p108_p4 = scmp.eq.s32.totalorder %s400_s17, 1 }
   0x8   : > { %s607_s21 = scalar_select %p89_p1, %s539_s14, %s91_s19  }
   0x9   : > { %p609_p5 = por %p102_p2, %p101_p0  ;;  %p613_p6 = por %p108_p4, %p107_p3 }
   0xa   : > { %p403_p7 = scmp.ge.s32.totalorder %s543_s15, 1  ;;  %p139_p8 = scmp.lt.s32.totalorder %s543_s15, 3 }
   0xc   : > { %p140_p9 = pnand %p403_p7, %p139_p8 }
   0xd   : > { %p162_p10 = scmp.lt.s32.totalorder (!%p140_p9), %s592_s16, 1  ;;  %s546_s27 = smov (!%p140_p9), 127  }
   0xe   : > { %143 = sbr.rel (%p140_p9) target bundleno = 358 (0x166), region = 32  ;;  %s159_s29 = sand.u32 (!%p140_p9), 1, %s535_s13  }
   0xf   : > { %s404_s30 = sshll.u32 (!%p140_p9), %s159_s29, 4  ;;  %s417_s6 = sshll.u32 (!%p140_p9), %s592_s16, 8 }
  0x10   : > { %s661_s9 = scalar_lea.hbm (!%p140_p9), %s706_s3, %s417_s6  ;;  %s663_s10 = scalar_lea.sflag (!%p140_p9), [#allocation3], %s159_s29 }
  0x11   : > { %s548_s11 = smov (!%p140_p9), [#allocation2]  }
  0x12   : > { %s487_s17 = sshll.u32 (!%p140_p9), %s548_s11, 4  ;;  %s488_s17 = int_to_ptr.vmem [resolvable:$false] %s487_s17 }
  0x13   : > { %v168_v0 = vld [vmem:[%s704_s1 + $0x10] sm:$0xff]  ;;  %vm175_vm0 = vcmask 64512   ;;  %v166_v1 = vld [vmem:[%s704_s1] sm:$0xff]  ;;  %v545_v2 = vmov 0   ;;  %s163_s28 = scalar_select %p162_p10, %s592_s16, 1  ;;  %v169_v5 = vld [vmem:[%s704_s1 + $0x18] sm:$0xff] }
  0x14   : > { %430 = vmatprep.mubr.msk.f32.mxu1 %vm175_vm0, %v168_v0  ;;  %482 = vset.pattern.permute.xlu0 %v545_v2  ;;  %v172_v3 = vld [vmem:[%s705_s2] sm:$0xff]  ;;  %v167_v6 = vld [vmem:[%s704_s1 + $0x8] sm:$0xff]  ;;  %vm321_vm1 = vcmask 130048   ;;  %s489_s19 = scalar_lea.vmem %s488_s17, 512 }
  0x15   : > { %427 = vmatprep.mubr.msk.f32.mxu0 %vm175_vm0, %v166_v1  ;;  %291 = vperm.xlu0 %482, %v172_v3   ;;  %s405_s4 = sshll.u32 %s163_s28, 3  ;;  %v170_v7 = vld [vmem:[%s704_s1 + $0x20] sm:$0xff]  ;;  %v173_v8 = vld [vmem:[%s705_s2 + $0x8] sm:$0xff]  ;;  %s547_s28 = smov 126  }
  0x16   : > { %s165_s7 = scalar_lea.vmem %s703_s0, %s405_s4  ;;  %v171_v9 = vld [vmem:[%s704_s1 + $0x28] sm:$0xff]  ;;  %s161_s4 = scalar_lea.vmem [#allocation2], %s404_s30 }
  0x17   : > { %v174_v4 = vld [vmem:[%s165_s7] sm:$0xff]  ;;  %s338_s5 = sshll.u32 %s161_s4, 4  ;;  %s656_s5 = int_to_ptr.vmem [resolvable:$true] %s338_s5 }
  0x18   : > { %436 = vmatprep.subr.mxu1 %v174_v4  ;;  %425 = vmatprep.subr.mxu0 %v174_v4  ;;  %s483_s16 = scalar_lea.vmem %s656_s5, 256  ;;  %p490_p0 = scmp.lt.s32.totalorder %s656_s5, %s488_s17 }
  0x19   : > { %437 = vmatpush3.msra.mxu1 %v174_v4  ;;  %426 = vmatpush3.msra.mxu0 %v174_v4  ;;  %p484_p11 = scmp.ne.s32.totalorder %s656_s5, %s483_s16  ;;  %p491_p1 = scmp.lt.s32.totalorder %s489_s19, %s483_s16 }
  0x1a   : > { %431 = vmatmul.mubr.msk.f32.vlgmr.msra.gmra.mxu1 %vm175_vm0, %v169_v5  ;;  %428 = vmatmul.mubr.msk.f32.vlgmr.msra.gmra.mxu0 %vm175_vm0, %v167_v6 }
  0x1b   : > { %433 = vmatprep.mubr.msk.f32.mxu1 %vm175_vm0, %v170_v7  ;;  %296 = vperm.xlu0 %482, %v173_v8   ;;  %p485_p12 = pnand %p484_p11, %p609_p5  ;;  %p492_p2 = por %p491_p1, %p490_p0 }
  0x1d   : > { %p486_p13 = pneg %p485_p12 }
  0x1e   : > { %434 = vmatmul.mubr.msk.f32.gmra.mxu1 %vm175_vm0, %v171_v9 }
  0x1f   : > { %p493_p3 = pnand %p492_p2, %p486_p13 }
  0x90   : > { %v292_v14 = vpop.permute.xlu0 %291 }
  0x96   : > { %v297_v16 = vpop.permute.xlu0 %296 }
  0xda   : > { %v432_v10 = vpop.f32.mrf.mxu1  ;;  %v429_v15 = vpop.f32.mrf.mxu0 }
  0xdb   : > { %305 = vrot.lane.b32.xlu1 %v432_v10, %s546_s27  ;;  %v300_v19 = vadd.f32 %v429_v15, %v297_v16 }
  0xdc   : > { %v270_v11 = vpop.f32.mrf.mxu1  ;;  %v260_v18 = vpop.f32.mrf.mxu0 }
  0xdd   : > { %v299_v20 = vadd.f32 %v292_v14, %v260_v18 }
  0xde   : > { %v435_v12 = vpop.f32.mrf.mxu1 }
  0xdf   : > { %303 = vrot.lane.b32.xlu1 %v270_v11, %s546_s27 }
  0xe0   : > { %v280_v13 = vpop.f32.mrf.mxu1 }
  0xe1   : > { %313 = vrot.lane.b32.xlu0 %v280_v13, %s547_s28 }
  0xe3   : > { %315 = vrot.lane.b32.xlu1 %v435_v12, %s547_s28 }
 0x14d   : > { %v306_v17 = vpop.permute.xlu1 %305 }
 0x14e   : > { %v310_v24 = vadd.f32 %v306_v17, %v300_v19 }
 0x151   : > { %v304_v21 = vpop.permute.xlu1 %303 }
 0x152   : > { %v309_v22 = vadd.f32 %v304_v21, %v299_v20 }
 0x153   : > { %v314_v23 = vpop.permute.xlu0 %313 }
 0x154   : > { %v319_v25 = vadd.f32 %v314_v23, %v309_v22 }
 0x155   : > { %v316_v26 = vpop.permute.xlu1 %315 }
 0x156   : > { %322 = vst.msk [vmem:[%s161_s4] sm:$0xff] %vm321_vm1, %v319_v25  ;;  %v320_v27 = vadd.f32 %v316_v26, %v310_v24 }
 0x158   : > { %323 = vst.msk [vmem:[%s161_s4 + $0x8] sm:$0xff] %vm321_vm1, %v320_v27 }
 0x159   : > { %496 = shalt.err (!%p493_p3)
}
 0x15a   : > { %s497_s20 = scalar_lea.hbm %s661_s9, 256  ;;  %s501_s26 = scalar_lea.hbm %s706_s3, 512 }
 0x15b   : > { %p498_p4 = scmp.ne.s32.totalorder %s661_s9, %s497_s20  ;;  %p502_p9 = scmp.lt.s32.totalorder %s661_s9, %s706_s3 }
 0x15c   : > { %p503_p10 = scmp.lt.s32.totalorder %s501_s26, %s497_s20 }
 0x15d   : > { %p499_p7 = pnand %p498_p4, %p609_p5 }
 0x15e   : > { %p504_p11 = por %p503_p10, %p502_p9 }
 0x15f   : > { %p500_p8 = pneg %p499_p7 }
 0x161   : > { %p505_p12 = pnand %p504_p11, %p500_p8 }
 0x163   : > { %508 = shalt.err (!%p505_p12)
}
 0x164   : > { %s549_s29 = smov 128   ;;  %s550_s30 = smov 8  }
 0x165   : > { %438 = dma.vmem_to_hbm [thread:$0]  (%p609_p5), %s656_s5, 256, %s661_s9, %s663_s10, %s549_s29, %s549_s29, %s550_s30  }
 0x166 PF: > { %p444_p13 = scmp.ge.s32.totalorder %s543_s15, 2  ;;  %s353_s4 = sand.u32 1, %s531_s12  }
 0x167   : > { %s354_s6 = scalar_lea.sflag [#allocation3], %s353_s4 }
 0x168   : > { %p441_p0 = pnand %p444_p13, %p613_p6 }
 0x16a   : > { %p442_p1 = pneg %p441_p0 }
 0x16c   : > { %526 = dma.done.wait (%p442_p1), %s354_s6, 256  }
 0x16d   : > { %528 = vsyncadd (%p442_p1), %s354_s6, 4294967040  ;;  %p13_p2 = scmp.ge.s32.totalorder %s596_s18, 4   ;;  %s709_s12 = smov %s535_s13 }
 0x16e   : > { %s710_s13 = smov %s539_s14  ;;  %s711_s14 = smov %s607_s21 }
 0x16f   : > { %s712_s15 = smov %s596_s18  ;;  %15 = sbr.rel (!%p13_p2) target bundleno = 3 (0x3), region = 67 }
 0x174   :  { %359 = vsyncpa [#allocation3], 1 }
 0x175   :  { %361 = vsyncpa [#allocation3 + $0x1], 1 }

</bundles_post_ra>
